<compile_context>
chip_gen: v5e
topology: v5e:2x2
jax: 0.10.0
libtpu: 0.0.40
codegen_flags: <defaults>
</compile_context>

<pallas_src>
import jax
import jax.numpy as jnp
from jax.experimental import pallas as pl
from jax.experimental.pallas import tpu as pltpu

H = 128          # hidden size ("size" in the PyTorch module)
EPS = 1e-6
TM_DEFAULT = 512  # row tile (sublane-aligned); 256-1024 all fine, 512 is a good default


def sublayer_connection_kernel(x_ref, w_ref, b_ref, gamma_ref, beta_ref, o_ref):
    x = x_ref[...].astype(jnp.float32)                          # (TM, H)

    # --- LayerNorm over the last dim (unbiased std, eps added to std) ---
    mean = jnp.mean(x, axis=-1, keepdims=True)                  # (TM, 1)
    centered = x - mean
    var_unbiased = jnp.sum(centered * centered, axis=-1, keepdims=True) * (1.0 / (H - 1))
    std = jnp.sqrt(var_unbiased)
    # Exact division (same ordering as the reference). Do NOT use approx reciprocal
    # here: its error exceeded the correctness tolerance and the divide is cheap.
    ln = gamma_ref[...] * centered / (std + EPS) + beta_ref[...]

    # --- sublayer: Linear(H, H) on the MXU (LHS cast to weight dtype, f32 accumulate) ---
    y = jnp.dot(ln.astype(w_ref.dtype), w_ref[...],
                preferred_element_type=jnp.float32) + b_ref[...].astype(jnp.float32)

    # --- dropout (eval mode = identity) + residual add ---
    o_ref[...] = (x + y).astype(o_ref.dtype)


def sublayer_connection(x, w, b, gamma, beta, *, tm=TM_DEFAULT):
    rows, h = x.shape
    assert h == H, f"hidden dim must be {H}"

    # Clamp the tile for tiny inputs (keep it sublane-aligned), then pad rows up to a
    # tile multiple so large tiles work for arbitrary batch*seq. Padded rows are pure
    # zeros (LayerNorm on them stays finite: 0 / (0 + eps) = 0) and are sliced off.
    tm = min(tm, max(8, ((rows + 7) // 8) * 8))
    padded_rows = pl.cdiv(rows, tm) * tm
    x_in = x if padded_rows == rows else jnp.pad(x, ((0, padded_rows - rows), (0, 0)))

    grid = (padded_rows // tm,)
    out = pl.pallas_call(
        sublayer_connection_kernel,
        out_shape=jax.ShapeDtypeStruct((padded_rows, H), x.dtype),
        grid_spec=pltpu.PrefetchScalarGridSpec(
            num_scalar_prefetch=0,
            grid=grid,
            in_specs=[
                pl.BlockSpec((tm, H), lambda i: (i, 0)),   # x tile (streamed)
                pl.BlockSpec((H, H), lambda i: (0, 0)),    # sublayer weight (resident)
                pl.BlockSpec((1, H), lambda i: (0, 0)),    # sublayer bias   (resident)
                pl.BlockSpec((1, H), lambda i: (0, 0)),    # LayerNorm gamma (a_2)
                pl.BlockSpec((1, H), lambda i: (0, 0)),    # LayerNorm beta  (b_2)
            ],
            out_specs=pl.BlockSpec((tm, H), lambda i: (i, 0)),
        ),
        compiler_params=pltpu.CompilerParams(
            dimension_semantics=("parallel",),             # megacore sharding
        ),
    )(x_in, w, b, gamma, beta)

    return out if padded_rows == rows else out[:rows]


def reference(x, w, b, gamma, beta):
    xf = x.astype(jnp.float32)
    mean = jnp.mean(xf, axis=-1, keepdims=True)
    centered = xf - mean
    var_unbiased = jnp.sum(centered * centered, axis=-1, keepdims=True) / (H - 1)
    std = jnp.sqrt(var_unbiased)
    ln = gamma * centered / (std + EPS) + beta
    y = ln @ w + b
    return (xf + y).astype(x.dtype)


if __name__ == "__main__":
    key = jax.random.PRNGKey(0)
    kx, kw, kx2 = jax.random.split(key, 3)

    # Deterministic parameter init (module __init__ semantics):
    gamma = jnp.ones((1, H), dtype=jnp.float32)     # LayerNorm a_2 init = ones
    beta = jnp.zeros((1, H), dtype=jnp.float32)     # LayerNorm b_2 init = zeros
    w = jax.random.normal(kw, (H, H), dtype=jnp.float32) * 0.02   # sublayer linear weight
    b = jnp.zeros((1, H), dtype=jnp.float32)                      # sublayer linear bias

    # --- small shape consistent with the module: batch=2, seq=8, hidden=128 ---
    batch, seq = 2, 8
    rows = batch * seq  # 16
    x = jax.random.normal(kx, (rows, H), dtype=jnp.float32)

    out = sublayer_connection(x, w, b, gamma, beta)
    jax.block_until_ready(out)
    ref = reference(x, w, b, gamma, beta)
    assert jnp.allclose(out, ref, atol=1e-3, rtol=1e-3), "mismatch vs reference (small)"

    # --- secondary check: multi-step grid + padded last tile (rows not a TM multiple) ---
    rows2 = 1100
    x2 = jax.random.normal(kx2, (rows2, H), dtype=jnp.float32)
    out2 = sublayer_connection(x2, w, b, gamma, beta)
    jax.block_until_ready(out2)
    ref2 = reference(x2, w, b, gamma, beta)
    assert out2.shape == (rows2, H)
    assert jnp.allclose(out2, ref2, atol=1e-3, rtol=1e-3), "mismatch vs reference (padded)"

    print("KERNEL_OK")
</pallas_src>

<mosaic_0001>
module attributes {stable_mosaic.version = 11 : i64} {
  func.func @sublayer_connection_kernel(%arg0: i32, %arg1: memref<16x128xf32, #tpu.memory_space<vmem>>, %arg2: memref<128x128xf32, #tpu.memory_space<vmem>>, %arg3: memref<1x128xf32, #tpu.memory_space<vmem>>, %arg4: memref<1x128xf32, #tpu.memory_space<vmem>>, %arg5: memref<1x128xf32, #tpu.memory_space<vmem>>, %arg6: memref<16x128xf32, #tpu.memory_space<vmem>>) attributes {dimension_semantics = [#tpu.dimension_semantics<parallel>], iteration_bounds = array<i64: 1>, scalar_prefetch = 0 : i64, scratch_operands = 0 : i64, tpu.core_type = #tpu.core_type<tc>, window_params = [{transform_indices = @transform_0, window_bounds = array<i64: 16, 128>}, {pipeline_mode = #tpu.pipeline_mode<synchronous>, transform_indices = @transform_1, window_bounds = array<i64: 128, 128>}, {pipeline_mode = #tpu.pipeline_mode<synchronous>, transform_indices = @transform_2, window_bounds = array<i64: 1, 128>}, {pipeline_mode = #tpu.pipeline_mode<synchronous>, transform_indices = @transform_3, window_bounds = array<i64: 1, 128>}, {pipeline_mode = #tpu.pipeline_mode<synchronous>, transform_indices = @transform_4, window_bounds = array<i64: 1, 128>}, {transform_indices = @transform_5, window_bounds = array<i64: 16, 128>}]} {
    %c0 = arith.constant 0 : index
    %c0_0 = arith.constant 0 : index
    %0 = vector.load %arg1[%c0, %c0_0] : memref<16x128xf32, #tpu.memory_space<vmem>>, vector<16x128xf32>
    %cst = arith.constant dense<0.000000e+00> : vector<16xf32>
    %1 = vector.multi_reduction <add>, %0, %cst [1] : vector<16x128xf32> to vector<16xf32>
    %2 = vector.shape_cast %1 : vector<16xf32> to vector<16x1xf32>
    %cst_1 = arith.constant 1.280000e+02 : f32
    %3 = vector.broadcast %cst_1 : f32 to vector<16x1xf32>
    %4 = arith.divf %2, %3 : vector<16x1xf32>
    %5 = vector.broadcast %4 : vector<16x1xf32> to vector<16x128xf32>
    %6 = arith.subf %0, %5 : vector<16x128xf32>
    %7 = arith.mulf %6, %6 : vector<16x128xf32>
    %cst_2 = arith.constant dense<0.000000e+00> : vector<16xf32>
    %8 = vector.multi_reduction <add>, %7, %cst_2 [1] : vector<16x128xf32> to vector<16xf32>
    %9 = vector.shape_cast %8 : vector<16xf32> to vector<16x1xf32>
    %cst_3 = arith.constant 0.00787401571 : f32
    %10 = vector.broadcast %cst_3 : f32 to vector<16x1xf32>
    %11 = arith.mulf %9, %10 : vector<16x1xf32>
    %12 = math.sqrt %11 : vector<16x1xf32>
    %c0_4 = arith.constant 0 : index
    %c0_5 = arith.constant 0 : index
    %13 = vector.load %arg4[%c0_4, %c0_5] : memref<1x128xf32, #tpu.memory_space<vmem>>, vector<1x128xf32>
    %14 = vector.broadcast %13 : vector<1x128xf32> to vector<16x128xf32>
    %15 = arith.mulf %14, %6 : vector<16x128xf32>
    %cst_6 = arith.constant 9.99999997E-7 : f32
    %16 = vector.broadcast %cst_6 : f32 to vector<16x1xf32>
    %17 = arith.addf %12, %16 : vector<16x1xf32>
    %18 = vector.broadcast %17 : vector<16x1xf32> to vector<16x128xf32>
    %19 = arith.divf %15, %18 : vector<16x128xf32>
    %c0_7 = arith.constant 0 : index
    %c0_8 = arith.constant 0 : index
    %20 = vector.load %arg5[%c0_7, %c0_8] : memref<1x128xf32, #tpu.memory_space<vmem>>, vector<1x128xf32>
    %21 = vector.broadcast %20 : vector<1x128xf32> to vector<16x128xf32>
    %22 = arith.addf %19, %21 : vector<16x128xf32>
    %c0_9 = arith.constant 0 : index
    %c0_10 = arith.constant 0 : index
    %23 = vector.load %arg2[%c0_9, %c0_10] : memref<128x128xf32, #tpu.memory_space<vmem>>, vector<128x128xf32>
    %cst_11 = arith.constant dense<0.000000e+00> : vector<16x128xf32>
    %24 = tpu.matmul %22, %23, %cst_11 {dimension_numbers = #tpu.dot_dimension_numbers<[1], [0], [0], [1], [0, 0, 1, 1], [], []>} : vector<16x128xf32>, vector<128x128xf32>, vector<16x128xf32> -> vector<16x128xf32>
    %c0_12 = arith.constant 0 : index
    %c0_13 = arith.constant 0 : index
    %25 = vector.load %arg3[%c0_12, %c0_13] : memref<1x128xf32, #tpu.memory_space<vmem>>, vector<1x128xf32>
    %26 = vector.broadcast %25 : vector<1x128xf32> to vector<16x128xf32>
    %27 = arith.addf %24, %26 : vector<16x128xf32>
    %28 = arith.addf %0, %27 : vector<16x128xf32>
    %c0_14 = arith.constant 0 : index
    %c0_15 = arith.constant 0 : index
    %29 = vector.load %arg6[%c0_14, %c0_15] : memref<16x128xf32, #tpu.memory_space<vmem>>, vector<16x128xf32>
    tpu.vector_store %arg6[%c0_14, %c0_15], %28 {strides = array<i32>} : memref<16x128xf32, #tpu.memory_space<vmem>>, vector<16x128xf32>,
    return
  }
  func.func @transform_0(%arg0: i32) -> (i32, i32) {
    %c0_i32 = arith.constant 0 : i32
    %c0_i32_0 = arith.constant 0 : i32
    return %arg0, %c0_i32 : i32, i32
  }
  func.func @transform_1(%arg0: i32) -> (i32, i32) {
    %c0_i32 = arith.constant 0 : i32
    %c0_i32_0 = arith.constant 0 : i32
    %c0_i32_1 = arith.constant 0 : i32
    return %c0_i32, %c0_i32_0 : i32, i32
  }
  func.func @transform_2(%arg0: i32) -> (i32, i32) {
    %c0_i32 = arith.constant 0 : i32
    %c0_i32_0 = arith.constant 0 : i32
    %c0_i32_1 = arith.constant 0 : i32
    return %c0_i32, %c0_i32_0 : i32, i32
  }
  func.func @transform_3(%arg0: i32) -> (i32, i32) {
    %c0_i32 = arith.constant 0 : i32
    %c0_i32_0 = arith.constant 0 : i32
    %c0_i32_1 = arith.constant 0 : i32
    return %c0_i32, %c0_i32_0 : i32, i32
  }
  func.func @transform_4(%arg0: i32) -> (i32, i32) {
    %c0_i32 = arith.constant 0 : i32
    %c0_i32_0 = arith.constant 0 : i32
    %c0_i32_1 = arith.constant 0 : i32
    return %c0_i32, %c0_i32_0 : i32, i32
  }
  func.func @transform_5(%arg0: i32) -> (i32, i32) {
    %c0_i32 = arith.constant 0 : i32
    %c0_i32_0 = arith.constant 0 : i32
    return %arg0, %c0_i32 : i32, i32
  }
}

</mosaic_0001>

<bundles_post_ra>
// kernel: tpu_custom_call.1
= control target key start
LH: loop header
LB: loop body
LE: loop exit
PB: predicated region body
PF: predicated region fallthrough
CT: control target
= control target key end

     0   :  { %10 = vsyncpa [#allocation3], 0  ;;  %s409_s0 = inlined_call_operand.hbm [shape: f32[16,128], index: 0, kind: input, shape index: {}]   ;;  %s410_s1 = inlined_call_operand.hbm [shape: f32[128,128], index: 1, kind: input, shape index: {}]   ;;  %s411_s2 = inlined_call_operand.vmem [shape: f32[1,128], index: 2, kind: input, shape index: {}]   ;;  %s412_s3 = inlined_call_operand.vmem [shape: f32[1,128], index: 3, kind: input, shape index: {}]   ;;  %s413_s4 = inlined_call_operand.vmem [shape: f32[1,128], index: 4, kind: input, shape index: {}]   ;;  %s414_s5 = inlined_call_operand.hbm [shape: f32[16,128], index: 5, kind: output, shape index: {}]  }
   0x1   :  { %11 = vsyncpa [#allocation6], 0 }
   0x2   :  { %12 = vsyncpa [#allocation4], 0  ;;  %s17_s20 = sshll.u32 %s409_s0, 4  ;;  %s326_s21 = smov [#allocation2]   ;;  %s18_s20 = int_to_ptr.hbm [resolvable:$true] %s17_s20 }
   0x3   :  { %s19_s22 = sshll.u32 %s326_s21, 4  ;;  %s30_s25 = sshll.u32 %s410_s1, 4  ;;  %s20_s22 = int_to_ptr.vmem [resolvable:$true] %s19_s22  ;;  %s31_s25 = int_to_ptr.hbm [resolvable:$true] %s30_s25 }
   0x4   :  { %s327_s26 = smov 128   ;;  %s328_s27 = smov 8  }
   0x5   :  { %25 = dma.hbm_to_vmem [thread:$0]  %s18_s20, 256, %s20_s22, [#allocation3], %s327_s26, %s327_s26, %s328_s27  }
   0x6   :  { %s329_s28 = smov [#allocation5]  }
   0x7   :  { %s32_s29 = sshll.u32 %s329_s28, 4  ;;  %s33_s29 = int_to_ptr.vmem [resolvable:$true] %s32_s29 }
   0x8   :  { %38 = dma.hbm_to_vmem [thread:$0]  %s31_s25, 2048, %s33_s29, [#allocation6], %s327_s26, %s327_s26, %s328_s27  }
   0x9   :  { %320 = dma.done.wait [#allocation3], 256  }
   0xa   :  { %321 = vsyncadd [#allocation3], 4294967040 }
   0xb   :  { %322 = dma.done.wait [#allocation6], 2048  }
   0xc   :  { %323 = vsyncadd [#allocation6], 4294965248  ;;  %v374_v0 = vld [vmem:[#allocation2] sm:$0xff]  ;;  %v377_v1 = vld [vmem:[#allocation2 + $0x8] sm:$0xff]  ;;  %v330_v2 = vmov 128.0   ;;  %s331_s7 = smov [#allocation7]  }
   0xd   :  { %55 = vadd.xlane.f32.xlu0 %v374_v0  ;;  %238 = vrcp.f32 %v330_v2  ;;  %v161_v17 = vld [vmem:[#allocation5 + $0x78] sm:$0xff]  ;;  %v160_v18 = vld [vmem:[#allocation5 + $0x70] sm:$0xff]  ;;  %v159_v19 = vld [vmem:[#allocation5 + $0x68] sm:$0xff]  ;;  %s197_s8 = sshll.u32 %s331_s7, 4  ;;  %s199_s11 = sshll.u32 %s414_s5, 4  ;;  %s198_s8 = int_to_ptr.vmem [resolvable:$true] %s197_s8  ;;  %s200_s11 = int_to_ptr.hbm [resolvable:$true] %s199_s11 }
   0xe   :  { %166 = vmatpush.msra.mxu0 %v161_v17  ;;  %213 = vmatpush.msra.mxu1 %v161_v17  ;;  %v158_v20 = vld [vmem:[#allocation5 + $0x60] sm:$0xff]  ;;  %v157_v21 = vld [vmem:[#allocation5 + $0x58] sm:$0xff]  ;;  %v156_v22 = vld [vmem:[#allocation5 + $0x50] sm:$0xff] }
   0xf   :  { %v155_v23 = vld [vmem:[#allocation5 + $0x48] sm:$0xff]  ;;  %v154_v24 = vld [vmem:[#allocation5 + $0x40] sm:$0xff]  ;;  %v153_v25 = vld [vmem:[#allocation5 + $0x38] sm:$0xff] }
  0x10   :  { %167 = vmatpush.msra.mxu0 %v160_v18  ;;  %214 = vmatpush.msra.mxu1 %v160_v18  ;;  %v152_v26 = vld [vmem:[#allocation5 + $0x30] sm:$0xff]  ;;  %v151_v29 = vld [vmem:[#allocation5 + $0x28] sm:$0xff]  ;;  %v150_v30 = vld [vmem:[#allocation5 + $0x20] sm:$0xff] }
  0x11   :  { %v149_v31 = vld [vmem:[#allocation5 + $0x18] sm:$0xff]  ;;  %v148_v32 = vld [vmem:[#allocation5 + $0x10] sm:$0xff]  ;;  %v147_v36 = vld [vmem:[#allocation5 + $0x8] sm:$0xff] }
  0x12   :  { %168 = vmatpush.msra.mxu0 %v159_v19  ;;  %215 = vmatpush.msra.mxu1 %v159_v19  ;;  %v146_v38 = vld [vmem:[#allocation5] sm:$0xff]  ;;  %v235_v63 = vld [vmem:[%s412_s3] ss:$0 sm:$0xff] }
  0x13   :  { %v239_v3 = vpop.eup %238 }
  0x14   :  { %v60_v4 = vmul.f32 128.0, %v239_v3  ;;  %vm64_vm0 = vweird.f32 %v239_v3  ;;  %169 = vmatpush.msra.mxu0 %v158_v20  ;;  %216 = vmatpush.msra.mxu1 %v158_v20 }
  0x15   :  { %57 = vadd.xlane.f32.xlu0 %v377_v1 }
  0x16   :  { %v61_v5 = vsub.f32 1.0, %v60_v4  ;;  %170 = vmatpush.msra.mxu0 %v157_v21  ;;  %217 = vmatpush.msra.mxu1 %v157_v21 }
  0x18   :  { %v62_v6 = vmul.f32 %v239_v3, %v61_v5  ;;  %171 = vmatpush.msra.mxu0 %v156_v22  ;;  %218 = vmatpush.msra.mxu1 %v156_v22 }
  0x1a   :  { %v63_v7 = vadd.f32 %v239_v3, %v62_v6  ;;  %172 = vmatpush.msra.mxu0 %v155_v23  ;;  %219 = vmatpush.msra.mxu1 %v155_v23 }
  0x1c   :  { %v65_v8 = vsel %vm64_vm0, %v239_v3, %v63_v7  ;;  %173 = vmatpush.msra.mxu0 %v154_v24  ;;  %220 = vmatpush.msra.mxu1 %v154_v24 }
  0x1e   :  { %174 = vmatpush.msra.mxu0 %v153_v25  ;;  %221 = vmatpush.msra.mxu1 %v153_v25 }
  0x20   :  { %175 = vmatpush.msra.mxu0 %v152_v26  ;;  %222 = vmatpush.msra.mxu1 %v152_v26  ;;  %v237_v26 = vld [vmem:[%s411_s2] ss:$0 sm:$0xff] }
  0x22   :  { %176 = vmatpush.msra.mxu0 %v151_v29  ;;  %223 = vmatpush.msra.mxu1 %v151_v29 }
  0x24   :  { %177 = vmatpush.msra.mxu0 %v150_v30  ;;  %224 = vmatpush.msra.mxu1 %v150_v30 }
  0x26   :  { %178 = vmatpush.msra.mxu0 %v149_v31  ;;  %225 = vmatpush.msra.mxu1 %v149_v31 }
  0x28   :  { %179 = vmatpush.msra.mxu0 %v148_v32  ;;  %226 = vmatpush.msra.mxu1 %v148_v32 }
  0x2a   :  { %180 = vmatpush.msra.mxu0 %v147_v36  ;;  %227 = vmatpush.msra.mxu1 %v147_v36 }
  0x2c   :  { %181 = vmatpush.msra.mxu0 %v146_v38  ;;  %228 = vmatpush.msra.mxu1 %v146_v38 }
  0x80   :  { %v56_v9 = vpop.xlane.xlu0 %55 }
  0x81   :  { %v66_v10 = vmul.f32 %v65_v8, %v56_v9  ;;  %v236_v9 = vld [vmem:[%s413_s4] ss:$0 sm:$0xff] }
  0x83   :  { %v381_v11 = vsub.f32 %v374_v0, %v66_v10 }
  0x85   :  { %v70_v12 = vmul.f32 %v381_v11, %v381_v11  ;;  %v106_v7 = vmul.f32 %v235_v63, %v381_v11 }
  0x87   :  { %72 = vadd.xlane.f32.xlu1 %v70_v12 }
  0x88   :  { %v58_v13 = vpop.xlane.xlu0 %57 }
  0x89   :  { %v67_v14 = vmul.f32 %v65_v8, %v58_v13 }
  0x8b   :  { %v386_v15 = vsub.f32 %v377_v1, %v67_v14 }
  0x8d   :  { %v71_v16 = vmul.f32 %v386_v15, %v386_v15  ;;  %v107_v21 = vmul.f32 %v235_v63, %v386_v15 }
  0x8f   :  { %74 = vadd.xlane.f32.xlu1 %v71_v16 }
  0xfa   :  { %v73_v27 = vpop.xlane.xlu1 %72 }
  0xfb   :  { %v76_v28 = vmul.f32 0.007874016, %v73_v27 }
  0xfd   :  { %240 = vrsqrt.f32 %v76_v28  ;;  %vm85_vm1 = vcmp.eq.f32.partialorder %v76_v28, inf  ;;  %v88_v47 = vand.u32 2147483648, %v76_v28  ;;  %vm87_vm2 = vcmp.eq.f32.partialorder %v76_v28, 0.0 }
 0x102   :  { %v75_v33 = vpop.xlane.xlu1 %74 }
 0x103   :  { %v241_v34 = vpop.eup %240  ;;  %v77_v35 = vmul.f32 0.007874016, %v75_v33 }
 0x104   :  { %v79_v37 = vmul.f32 %v241_v34, %v76_v28 }
 0x105   :  { %242 = vrsqrt.f32 %v77_v35  ;;  %vm97_vm3 = vcmp.eq.f32.partialorder %v77_v35, inf  ;;  %v100_v55 = vand.u32 2147483648, %v77_v35  ;;  %vm99_vm4 = vcmp.eq.f32.partialorder %v77_v35, 0.0 }
 0x106   :  { %v80_v39 = vmul.f32 %v241_v34, %v79_v37 }
 0x108   :  { %v81_v40 = vmul.f32 0.5, %v80_v39 }
 0x10a   :  { %v82_v41 = vsub.f32 1.5, %v81_v40 }
 0x10b   :  { %v243_v42 = vpop.eup %242 }
 0x10c   :  { %v83_v43 = vmul.f32 %v241_v34, %v82_v41  ;;  %v91_v44 = vmul.f32 %v243_v42, %v77_v35 }
 0x10e   :  { %v84_v45 = vmul.f32 %v83_v43, %v76_v28  ;;  %v92_v46 = vmul.f32 %v243_v42, %v91_v44 }
 0x110   :  { %v93_v48 = vmul.f32 0.5, %v92_v46  ;;  %v86_v49 = vsel %vm85_vm1, %v76_v28, %v84_v45 }
 0x111   :  { %v89_v50 = vsel %vm87_vm2, %v88_v47, %v86_v49 }
 0x112   :  { %v94_v51 = vsub.f32 1.5, %v93_v48  ;;  %v108_v52 = vadd.f32 1e-06, %v89_v50 }
 0x114   :  { %v95_v53 = vmul.f32 %v243_v42, %v94_v51  ;;  %244 = vrcp.f32 %v108_v52  ;;  %v121_v62 = vand.u32 2147483648, %v108_v52  ;;  %v119_v3 = vand.u32 2147483647, %v108_v52 }
 0x115   :  { %vm115_vm6 = vweird.f32 %v108_v52 }
 0x116   :  { %v96_v54 = vmul.f32 %v95_v53, %v77_v35  ;;  %v122_v6 = vor.u32 1.1754944e-38, %v121_v62  ;;  %vm120_vm8 = vcmp.eq.f32.partialorder %v119_v3, 8.507059e+37 }
 0x118   :  { %v98_v56 = vsel %vm97_vm3, %v77_v35, %v96_v54 }
 0x119   :  { %v101_v57 = vsel %vm99_vm4, %v100_v55, %v98_v56 }
 0x11a   :  { %v245_v58 = vpop.eup %244  ;;  %v109_v59 = vadd.f32 1e-06, %v101_v57 }
 0x11b   :  { %v111_v60 = vmul.f32 %v245_v58, %v108_v52  ;;  %vm116_vm5 = vweird.f32 %v245_v58 }
 0x11c   :  { %246 = vrcp.f32 %v109_v59  ;;  %vm117_vm7 = vmor %vm115_vm6, %vm116_vm5  ;;  %v136_v16 = vand.u32 2147483648, %v109_v59  ;;  %v134_v19 = vand.u32 2147483647, %v109_v59  ;;  %vm130_vm10 = vweird.f32 %v109_v59 }
 0x11d   :  { %v112_v61 = vsub.f32 1.0, %v111_v60 }
 0x11e   :  { %v137_v11 = vor.u32 1.1754944e-38, %v136_v16  ;;  %vm135_vm12 = vcmp.eq.f32.partialorder %v134_v19, 8.507059e+37 }
 0x11f   :  { %v113_v2 = vmul.f32 %v245_v58, %v112_v61 }
 0x121   :  { %v114_v4 = vadd.f32 %v245_v58, %v113_v2 }
 0x122   :  { %v247_v5 = vpop.eup %246 }
 0x123   :  { %v118_v8 = vsel %vm117_vm7, %v245_v58, %v114_v4  ;;  %v126_v10 = vmul.f32 %v247_v5, %v109_v59  ;;  %vm131_vm9 = vweird.f32 %v247_v5 }
 0x124   :  { %v123_v12 = vsel %vm120_vm8, %v122_v6, %v118_v8  ;;  %vm132_vm11 = vmor %vm130_vm10, %vm131_vm9 }
 0x125   :  { %v124_v13 = vmul.f32 %v123_v12, %v106_v7  ;;  %v127_v14 = vsub.f32 1.0, %v126_v10 }
 0x127   :  { %v144_v17 = vadd.f32 %v236_v9, %v124_v13  ;;  %v128_v18 = vmul.f32 %v247_v5, %v127_v14 }
 0x129   :  { %182 = vmatmul.f32.vlgmr.msra.gmra.mxu0 %v144_v17  ;;  %v129_v20 = vadd.f32 %v247_v5, %v128_v18 }
 0x12b   :  { %v133_v22 = vsel %vm132_vm11, %v247_v5, %v129_v20 }
 0x12c   :  { %v138_v23 = vsel %vm135_vm12, %v137_v11, %v133_v22 }
 0x12d   :  { %v139_v24 = vmul.f32 %v138_v23, %v107_v21 }
 0x12f   :  { %v145_v25 = vadd.f32 %v236_v9, %v139_v24 }
 0x131   :  { %185 = vmatmul.f32.vlgmr.msra.gmra.mxu1 %v145_v25 }
 0x1a6   :  { %v183_v27 = vpop.f32.mrf.mxu0 }
 0x1a7   :  { %v184_v28 = vadd.f32 %v237_v26, %v183_v27 }
 0x1a9   :  { %v189_v29 = vadd.f32 %v184_v28, %v374_v0 }
 0x1ab   :  { %191 = vst [vmem:[#allocation7] sm:$0xff] %v189_v29 }
 0x1ae   :  { %v186_v30 = vpop.f32.mrf.mxu1 }
 0x1af   :  { %v187_v15 = vadd.f32 %v237_v26, %v186_v30 }
 0x1b1   :  { %v190_v31 = vadd.f32 %v187_v15, %v377_v1 }
 0x1b3   :  { %192 = vst [vmem:[#allocation7 + $0x8] sm:$0xff] %v190_v31 }
 0x1b4   :  { %205 = dma.vmem_to_hbm [thread:$0]  %s198_s8, 256, %s200_s11, [#allocation4], %s327_s26, %s327_s26, %s328_s27  }
 0x1b5   :  { %324 = dma.done.wait [#allocation4], 256  }
 0x1b6   :  { %325 = vsyncadd [#allocation4], 4294967040 }
 0x1b7   :  { %210 = vsyncpa [#allocation3], 1 }
 0x1b8   :  { %211 = vsyncpa [#allocation6], 1 }
 0x1b9   :  { %212 = vsyncpa [#allocation4], 1 }

</bundles_post_ra>
